<compile_context>
chip_gen: v7x
topology: tpu7x:2x2x1
jax: 0.10.0
libtpu: 0.0.40
codegen_flags: <defaults>
</compile_context>

<pallas_src>
import math

import jax
import jax.numpy as jnp
import numpy as np
from jax.experimental import pallas as pl
from jax.experimental.pallas import tpu as pltpu


def _disc_kernel(ws_ref, b_ref, hrl_ref, hfk_ref, o_ref):
    ws = ws_ref[0]                                    # (1, n_h), already in h's dtype
    bias = b_ref[0]                                   # f32 scalar from SMEM

    hrl = hrl_ref[0]                                  # (n_tile, n_h) native dtype
    hfk = hfk_ref[0]                                  # (n_tile, n_h)

    # score[n] = ws . h[n, :]  -- contract the feature (lane) axis of both
    # operands (q @ k.T pattern), producing a lane-major (1, n_tile) row so the
    # output store is lane-dense. MXU accumulates in f32.
    dn = (((1,), (1,)), ((), ()))
    sc_rl = jax.lax.dot_general(ws, hrl, dimension_numbers=dn,
                                preferred_element_type=jnp.float32)   # (1, n_tile)
    sc_fk = jax.lax.dot_general(ws, hfk, dimension_numbers=dn,
                                preferred_element_type=jnp.float32)   # (1, n_tile)

    o_ref[0, 0:1, :] = (sc_rl + bias).astype(o_ref.dtype)             # real half
    o_ref[0, 1:2, :] = (sc_fk + bias).astype(o_ref.dtype)             # fake half


def _vmem_capacity_bytes() -> int:
    try:
        return int(pltpu.get_tpu_info().vmem_capacity_bytes)
    except Exception:
        return 64 * 1024 * 1024  # conservative (v7x-like) fallback


def _pick_n_tile(n_nodes: int, n_h: int, itemsize: int, vmem_cap: int) -> int:
    # Budget for the pipelined h tiles only (2 inputs x 2 pipeline buffers each).
    # v5e/v6e (128 MiB physical VMEM): allow ~24 MiB; v7x (64 MiB): ~16 MiB.
    budget = 24 * 1024 * 1024 if vmem_cap >= 100 * 1024 * 1024 else 16 * 1024 * 1024
    for t in (2048, 1024, 512, 256, 128):   # all multiples of (8, 128) constraints
        if t <= n_nodes and 4 * t * n_h * itemsize <= budget:
            return t
    return n_nodes  # small N: single full-extent block


def discriminator(summary, h_rl, h_fk, weight, bias):
    """Pallas TPU forward of Discriminator.

    summary: (B, n_h); h_rl, h_fk: (B, N, n_h);
    weight:  (n_h, n_h)  (== torch nn.Bilinear(n_h, n_h, 1).weight[0]);
    bias:    (1,) float32.
    Returns logits of shape (B, 2*N) == torch.cat((sc_rl, sc_fk), dim=1).
    """
    B, N, n_h = h_rl.shape
    assert h_fk.shape == (B, N, n_h) and summary.shape == (B, n_h)

    itemsize = jnp.dtype(h_rl.dtype).itemsize
    vmem_cap = _vmem_capacity_bytes()
    n_tile = _pick_n_tile(N, n_h, itemsize, vmem_cap)
    n_steps = pl.cdiv(N, n_tile)
    vmem_limit = 64 * 1024 * 1024 if vmem_cap >= 100 * 1024 * 1024 else 32 * 1024 * 1024

    # ws[b, :] = W @ summary[b, :] -- tiny (B, n_h) matmul, done once in XLA.
    # Kept f32 then cast to h's dtype (no-op for f32 inputs, bf16 for bf16 inputs)
    # so the kernel never upcasts the big h tiles.
    ws = jax.lax.dot_general(summary.astype(jnp.float32), weight.astype(jnp.float32),
                             dimension_numbers=(((1,), (1,)), ((), ())),
                             preferred_element_type=jnp.float32)          # (B, n_h)
    ws = ws.astype(h_rl.dtype).reshape(B, 1, n_h)
    bias = jnp.asarray(bias, jnp.float32).reshape(1)

    flops = 2 * (2 * B * N * n_h)
    bytes_accessed = ((2 * B * N * n_h + B * n_h) * itemsize
                      + 2 * B * N * itemsize + 4)

    out = pl.pallas_call(
        _disc_kernel,
        out_shape=jax.ShapeDtypeStruct((B, 2, N), h_rl.dtype),
        grid_spec=pltpu.PrefetchScalarGridSpec(
            num_scalar_prefetch=0,
            grid=(B, n_steps),
            in_specs=[
                pl.BlockSpec((1, 1, n_h), lambda b, n: (b, 0, 0)),        # ws[b]
                pl.BlockSpec(memory_space=pltpu.MemorySpace.SMEM),        # bias scalar
                pl.BlockSpec((1, n_tile, n_h), lambda b, n: (b, n, 0)),   # h_rl tile
                pl.BlockSpec((1, n_tile, n_h), lambda b, n: (b, n, 0)),   # h_fk tile
            ],
            out_specs=pl.BlockSpec((1, 2, n_tile), lambda b, n: (b, 0, n)),
        ),
        compiler_params=pltpu.CompilerParams(
            dimension_semantics=("parallel", "parallel"),
            vmem_limit_bytes=vmem_limit),
        cost_estimate=pl.CostEstimate(flops=flops, transcendentals=0,
                                      bytes_accessed=bytes_accessed),
    )(ws, bias, h_rl, h_fk)

    # (B, 2, N) -> (B, 2*N): contiguous merge, identical to torch.cat(..., dim=1).
    return out.reshape(B, 2 * N)


if __name__ == "__main__":
    B, N, n_h = 2, 8, 32
    key = jax.random.PRNGKey(0)
    k1, k2, k3, k4, k5 = jax.random.split(key, 5)

    summary = jax.random.normal(k1, (B, n_h), dtype=jnp.float32)
    h_rl = jax.random.normal(k2, (B, N, n_h), dtype=jnp.float32)
    h_fk = jax.random.normal(k3, (B, N, n_h), dtype=jnp.float32)

    limit = math.sqrt(6.0 / (n_h + n_h))  # xavier_uniform_ range
    weight = jax.random.uniform(k4, (n_h, n_h), minval=-limit, maxval=limit,
                                dtype=jnp.float32)
    # Module init fills bias with 0; use a nonzero value to exercise the add path.
    bias = jax.random.normal(k5, (1,), dtype=jnp.float32) * 0.1

    logits = jax.block_until_ready(discriminator(summary, h_rl, h_fk, weight, bias))

    # Pure-numpy reference of the torch forward (float64 accumulation).
    s_np = np.asarray(summary, np.float64)
    w_np = np.asarray(weight, np.float64)
    hr_np = np.asarray(h_rl, np.float64)
    hf_np = np.asarray(h_fk, np.float64)
    b_np = float(np.asarray(bias)[0])
    ws_np = np.einsum("ij,bj->bi", w_np, s_np)
    ref = np.concatenate([np.einsum("bnf,bf->bn", hr_np, ws_np) + b_np,
                          np.einsum("bnf,bf->bn", hf_np, ws_np) + b_np], axis=1)

    assert logits.shape == (B, 2 * N), logits.shape
    # Tolerance sized for MXU default (bf16 multi-pass) f32 matmul precision.
    assert np.allclose(np.asarray(logits, np.float64), ref, rtol=2e-2, atol=5e-2), \
        "mismatch vs reference"
    print("KERNEL_OK")
</pallas_src>

<mosaic_0001>
module attributes {stable_mosaic.version = 11 : i64} {
  func.func @_disc_kernel(%arg0: i32, %arg1: i32, %arg2: memref<1x1x32xf32, #tpu.memory_space<vmem>>, %arg3: memref<1xf32, #tpu.memory_space<smem>>, %arg4: memref<1x8x32xf32, #tpu.memory_space<vmem>>, %arg5: memref<1x8x32xf32, #tpu.memory_space<vmem>>, %arg6: memref<1x2x8xf32, #tpu.memory_space<vmem>>) attributes {dimension_semantics = [#tpu.dimension_semantics<parallel>, #tpu.dimension_semantics<parallel>], iteration_bounds = array<i64: 2, 1>, scalar_prefetch = 0 : i64, scratch_operands = 0 : i64, tpu.core_type = #tpu.core_type<tc>, window_params = [{transform_indices = @transform_0, window_bounds = array<i64: 1, 1, 32>}, {transform_indices = @transform_1, window_bounds = array<i64: 1>}, {transform_indices = @transform_2, window_bounds = array<i64: 1, 8, 32>}, {transform_indices = @transform_3, window_bounds = array<i64: 1, 8, 32>}, {transform_indices = @transform_4, window_bounds = array<i64: 1, 2, 8>}]} {
    %c0 = arith.constant 0 : index
    %c0_0 = arith.constant 0 : index
    %c0_1 = arith.constant 0 : index
    %0 = vector.load %arg2[%c0, %c0_0, %c0_1] : memref<1x1x32xf32, #tpu.memory_space<vmem>>, vector<1x1x32xf32>
    %1 = vector.shape_cast %0 : vector<1x1x32xf32> to vector<1x32xf32>
    %c0_2 = arith.constant 0 : index
    %2 = memref.load %arg3[%c0_2] : memref<1xf32, #tpu.memory_space<smem>>
    %c0_3 = arith.constant 0 : index
    %c0_4 = arith.constant 0 : index
    %c0_5 = arith.constant 0 : index
    %3 = vector.load %arg4[%c0_3, %c0_4, %c0_5] : memref<1x8x32xf32, #tpu.memory_space<vmem>>, vector<1x8x32xf32>
    %4 = vector.shape_cast %3 : vector<1x8x32xf32> to vector<8x32xf32>
    %c0_6 = arith.constant 0 : index
    %c0_7 = arith.constant 0 : index
    %c0_8 = arith.constant 0 : index
    %5 = vector.load %arg5[%c0_6, %c0_7, %c0_8] : memref<1x8x32xf32, #tpu.memory_space<vmem>>, vector<1x8x32xf32>
    %6 = vector.shape_cast %5 : vector<1x8x32xf32> to vector<8x32xf32>
    %cst = arith.constant dense<0.000000e+00> : vector<1x8xf32>
    %7 = tpu.matmul %1, %4, %cst {dimension_numbers = #tpu.dot_dimension_numbers<[1], [1], [0], [0], [0, 0, 1, 0], [], []>} : vector<1x32xf32>, vector<8x32xf32>, vector<1x8xf32> -> vector<1x8xf32>
    %cst_9 = arith.constant dense<0.000000e+00> : vector<1x8xf32>
    %8 = tpu.matmul %1, %6, %cst_9 {dimension_numbers = #tpu.dot_dimension_numbers<[1], [1], [0], [0], [0, 0, 1, 0], [], []>} : vector<1x32xf32>, vector<8x32xf32>, vector<1x8xf32> -> vector<1x8xf32>
    %9 = vector.broadcast %2 : f32 to vector<1x8xf32>
    %10 = arith.addf %7, %9 : vector<1x8xf32>
    %c0_10 = arith.constant 0 : index
    %c0_11 = arith.constant 0 : index
    %c0_12 = arith.constant 0 : index
    %11 = vector.load %arg6[%c0_10, %c0_11, %c0_12] : memref<1x2x8xf32, #tpu.memory_space<vmem>>, vector<1x1x8xf32>
    %12 = vector.shape_cast %11 : vector<1x1x8xf32> to vector<1x8xf32>
    %13 = vector.shape_cast %10 : vector<1x8xf32> to vector<1x1x8xf32>
    tpu.vector_store %arg6[%c0_10, %c0_11, %c0_12], %13 {strides = array<i32>} : memref<1x2x8xf32, #tpu.memory_space<vmem>>, vector<1x1x8xf32>,
    %14 = vector.broadcast %2 : f32 to vector<1x8xf32>
    %15 = arith.addf %8, %14 : vector<1x8xf32>
    %c0_13 = arith.constant 0 : index
    %c1 = arith.constant 1 : index
    %c0_14 = arith.constant 0 : index
    %16 = vector.load %arg6[%c0_13, %c1, %c0_14] : memref<1x2x8xf32, #tpu.memory_space<vmem>>, vector<1x1x8xf32>
    %17 = vector.shape_cast %16 : vector<1x1x8xf32> to vector<1x8xf32>
    %18 = vector.shape_cast %15 : vector<1x8xf32> to vector<1x1x8xf32>
    tpu.vector_store %arg6[%c0_13, %c1, %c0_14], %18 {strides = array<i32>} : memref<1x2x8xf32, #tpu.memory_space<vmem>>, vector<1x1x8xf32>,
    return
  }
  func.func @transform_0(%arg0: i32, %arg1: i32) -> (i32, i32, i32) {
    %c0_i32 = arith.constant 0 : i32
    %c0_i32_0 = arith.constant 0 : i32
    %c0_i32_1 = arith.constant 0 : i32
    return %arg0, %c0_i32, %c0_i32_0 : i32, i32, i32
  }
  func.func @transform_1(%arg0: i32, %arg1: i32) -> i32 {
    %c0_i32 = arith.constant 0 : i32
    %c0_i32_0 = arith.constant 0 : i32
    return %c0_i32 : i32
  }
  func.func @transform_2(%arg0: i32, %arg1: i32) -> (i32, i32, i32) {
    %c0_i32 = arith.constant 0 : i32
    %c0_i32_0 = arith.constant 0 : i32
    return %arg0, %arg1, %c0_i32 : i32, i32, i32
  }
  func.func @transform_3(%arg0: i32, %arg1: i32) -> (i32, i32, i32) {
    %c0_i32 = arith.constant 0 : i32
    %c0_i32_0 = arith.constant 0 : i32
    return %arg0, %arg1, %c0_i32 : i32, i32, i32
  }
  func.func @transform_4(%arg0: i32, %arg1: i32) -> (i32, i32, i32) {
    %c0_i32 = arith.constant 0 : i32
    %c0_i32_0 = arith.constant 0 : i32
    return %arg0, %c0_i32, %arg1 : i32, i32, i32
  }
}

</mosaic_0001>

<bundles_post_ra>
// kernel: tpu_custom_call.1
= control target key start
LH: loop header
LB: loop body
LE: loop exit
PB: predicated region body
PF: predicated region fallthrough
CT: control target
= control target key end

     0   :  { %s1081_s0 = inlined_call_operand.vmem [shape: f32[2,1,32], index: 0, kind: input, shape index: {}]   ;;  %s1082_s1 = inlined_call_operand.<no memory space> [shape: f32[1], index: 1, kind: input, shape index: {}]   ;;  %s1083_s2 = inlined_call_operand.hbm [shape: f32[2,8,32], index: 2, kind: input, shape index: {}]   ;;  %s1084_s3 = inlined_call_operand.hbm [shape: f32[2,8,32], index: 3, kind: input, shape index: {}]   ;;  %s1085_s4 = inlined_call_operand.hbm [shape: f32[2,2,8], index: 4, kind: output, shape index: {}]  }
   0x1   :  { %9 = sst [smem:[#allocation2]] %s1082_s1 }
   0x2   :  { %10 = vsyncpa [#allocation4], 0 }
   0x3   :  { %12 = vsyncpa [#allocation4 + $0x1], 0 }
   0x4   :  { %13 = vsyncpa [#allocation7], 0 }
   0x5   :  { %15 = vsyncpa [#allocation7 + $0x1], 0 }
   0x6   :  { %16 = vsyncpa [#allocation5], 0 }
   0x7   :  { %18 = vsyncpa [#allocation5 + $0x1], 0  ;;  %s855_s17 = smov 0   ;;  %s857_s18 = smov 0  }
   0x8   :  { %s859_s19 = smov 0   ;;  %s861_s20 = smov 0  }
   0x9   :  { %s863_s21 = smov 0   ;;  %s865_s22 = smov 0  }
   0xa LB: > { %s571_s1 = sadd.s32 4294967295, %s820_s22   ;;  %s572_s23 = sadd.s32 4294967294, %s820_s22   ;;  %s820_s22 = sphi %s865_s22, %s24_s22   ;;  %s816_s21 = sphi %s863_s21, %s1105_s21   ;;  %s812_s20 = sphi %s861_s20, %s1104_s20   ;;  %s808_s19 = sphi %s859_s19, %s1103_s19   ;;  %s804_s18 = sphi %s857_s18, %s1102_s18   ;;  %s800_s17 = sphi %s855_s17, %s1101_s17  }
   0xb   : > { %s36_s24 = sadd.s32 1, %s816_s21  ;;  %s92_s25 = sadd.s32 1, %s808_s19 }
   0xc   : > { %p38_p0 = scmp.ge.s32.totalorder %s36_s24, 2  ;;  %p99_p1 = scmp.ne.s32.totalorder %s808_s19, %s804_s18 }
   0xd   : > { %p100_p2 = scmp.eq.s32.totalorder %s820_s22, 0  ;;  %p105_p3 = scmp.ne.s32.totalorder %s804_s18, %s800_s17 }
   0xe   : > { %s1107_s24 = smov (%p38_p0, %s36_s24), 0  ;;  %p106_p5 = scmp.eq.s32.totalorder %s571_s1, 0 }
   0xf   : > { %p896_p4 = por %p100_p2, %p99_p1  ;;  %s87_s27 = ssub.s32 %s816_s21, %s1107_s24 }
  0x10   : > { %p159_p6 = scmp.eq.s32.totalorder %s571_s1, 1  ;;  %p90_p7 = scmp.eq.s32.totalorder %s87_s27, 0 }
  0x11   : > { %p902_p8 = por %p106_p5, %p105_p3  ;;  %p165_p10 = scmp.eq.s32.totalorder %s572_s23, 1 }
  0x12   : > { %p906_p9 = por %p159_p6, %p99_p1  ;;  %p622_p13 = scmp.lt.s32.totalorder %s820_s22, 2 }
  0x13   : > { %s1089_s28 = scalar_select %p902_p8, 1, 0 }
  0x14   : > { %s1090_s29 = scalar_select %p906_p9, 1, 0 }
  0x15   : > { %s911_s30 = scalar_select %p90_p7, %s808_s19, %s92_s25  }
  0x16   : > { %p913_p11 = por %p165_p10, %p105_p3  ;;  %s920_s6 = sand.u32 1, %s808_s19  }
  0x17   : > { %s575_s7 = sshll.u32 %s920_s6, 3  ;;  %s576_s8 = sshll.u32 %s816_s21, 7 }
  0x18   : > { %s1091_s5 = scalar_select %p913_p11, 1, 0 }
  0x19   : > { %s929_s11 = scalar_lea.hbm %s1083_s2, %s576_s8  ;;  %s198_s12 = scalar_lea.vmem [#allocation3], %s575_s7 }
  0x1a   : > { %s206_s13 = sshll.u32 %s198_s12, 4  ;;  %p937_p0 = pnand %p622_p13, %p896_p4  ;;  %s933_s13 = int_to_ptr.vmem [resolvable:$true] %s206_s13 }
  0x1b   : > { %s195_s15 = scalar_lea.sflag [#allocation4], %s920_s6  ;;  %s674_s16 = scalar_lea.hbm %s929_s11, 128 }
  0x1c   : > { %p675_p3 = scmp.ne.s32.totalorder %s929_s11, %s674_s16  ;;  %p676_p5 = pneg %p937_p0 }
  0x1d   : > { %s679_s25 = scalar_lea.hbm %s1083_s2, 256  ;;  %p680_p4 = scmp.lt.u32.totalorder %s929_s11, %s1083_s2 }
  0x1e   : > { %p677_p6 = pnand %p676_p5, %p675_p3  ;;  %p681_p10 = scmp.lt.u32.totalorder %s679_s25, %s674_s16 }
  0x1f   : > { %p683_p12 = scmp.lt.u32.totalorder %s674_s16, %s929_s11 }
  0x20   : > { %p678_p7 = pneg %p677_p6  ;;  %p682_p13 = por %p681_p10, %p680_p4 }
  0x22   : > { %p684_p1 = por %p683_p12, %p682_p13 }
  0x24   : > { %p685_p2 = pnand %p684_p1, %p678_p7 }
  0x26   : > { %688 = shalt.err (!%p685_p2)
}
  0x27   : > { %s689_s9 = scalar_lea.vmem %s933_s13, 128  ;;  %s822_s10 = smov [#allocation3]  }
  0x28   : > { %p690_p3 = scmp.ne.s32.totalorder %s933_s13, %s689_s9  ;;  %s694_s12 = sshll.u32 %s822_s10, 4  ;;  %s695_s12 = int_to_ptr.vmem [resolvable:$false] %s694_s12 }
  0x29   : > { %s696_s1 = scalar_lea.vmem %s695_s12, 256  ;;  %p697_p9 = scmp.lt.s32.totalorder %s933_s13, %s695_s12 }
  0x2a   : > { %p692_p6 = pnand %p690_p3, %p676_p5  ;;  %p698_p4 = scmp.lt.s32.totalorder %s696_s1, %s689_s9 }
  0x2c   : > { %p693_p11 = pneg %p692_p6  ;;  %p699_p10 = por %p698_p4, %p697_p9 }
  0x2e   : > { %p700_p12 = pnand %p699_p10, %p693_p11 }
  0x30   : > { %703 = shalt.err (!%p700_p12)
}
  0x31   : > { %614 = dma.hbm_to_vmem [thread:$0]  (!%p937_p0), %s929_s11, 128, %s933_s13, %s195_s15  }
  0x32   : > { %p1093_p1 = scmp.lt.s32.totalorder %s820_s22, 3  ;;  %p1094_p2 = scmp.ge.s32.totalorder %s820_s22, 1 }
  0x33   : > { %s982_s26 = scalar_lea.hbm %s1084_s3, %s576_s8  ;;  %s217_s27 = scalar_lea.vmem [#allocation6], %s575_s7 }
  0x34   : > { %p973_p7 = pnand %p1094_p2, %p1093_p1  ;;  %s225_s9 = sshll.u32 %s217_s27, 4  ;;  %s226_s9 = int_to_ptr.vmem [resolvable:$true] %s225_s9 }
  0x35   : > { %s214_s11 = scalar_lea.sflag [#allocation7], %s920_s6  ;;  %s704_s13 = scalar_lea.hbm %s982_s26, 128 }
  0x36   : > { %s1095_s16 = scalar_select %p973_p7, 1, 0 }
  0x37   : > { %p705_p9 = scmp.ne.s32.totalorder %s982_s26, %s704_s13  ;;  %s709_s8 = scalar_lea.hbm %s1084_s3, 256 }
  0x38   : > { %p710_p3 = scmp.lt.u32.totalorder %s982_s26, %s1084_s3  ;;  %p711_p6 = scmp.lt.u32.totalorder %s709_s8, %s704_s13 }
  0x39   : > { %p707_p11 = pnand %p705_p9, %p676_p5  ;;  %p713_p10 = scmp.lt.u32.totalorder %s704_s13, %s982_s26 }
  0x3a   : > { %p712_p4 = por %p711_p6, %p710_p3 }
  0x3b   : > { %p708_p13 = pneg %p707_p11 }
  0x3c   : > { %p714_p12 = por %p713_p10, %p712_p4 }
  0x3e   : > { %p715_p1 = pnand %p714_p12, %p708_p13 }
  0x40   : > { %718 = shalt.err (!%p715_p1)
}
  0x41   : > { %s719_s6 = scalar_lea.vmem %s226_s9, 128  ;;  %s823_s7 = smov [#allocation6]  }
  0x42   : > { %p720_p2 = scmp.ne.s32.totalorder %s226_s9, %s719_s6  ;;  %s724_s23 = sshll.u32 %s823_s7, 4  ;;  %s725_s23 = int_to_ptr.vmem [resolvable:$false] %s724_s23 }
  0x43   : > { %s726_s25 = scalar_lea.vmem %s725_s23, 256  ;;  %p727_p8 = scmp.lt.s32.totalorder %s226_s9, %s725_s23 }
  0x44   : > { %p722_p9 = pnand %p720_p2, %p676_p5  ;;  %p728_p7 = scmp.lt.s32.totalorder %s726_s25, %s719_s6 }
  0x46   : > { %p723_p11 = pneg %p722_p9  ;;  %p729_p3 = por %p728_p7, %p727_p8 }
  0x48   : > { %p730_p6 = pnand %p729_p3, %p723_p11 }
  0x4a   : > { %733 = shalt.err (!%p730_p6)
}
  0x4b   : > { %617 = dma.hbm_to_vmem [thread:$0]  (!%p937_p0), %s982_s26, 128, %s226_s9, %s214_s11  }
  0x4c   : > { %p1096_p13 = scmp.ne.s32.totalorder %s1095_s16, 0 }
  0x4d   : > { %s1009_s27 = sand.u32 (!%p1096_p13), 1, %s804_s18   ;;  %p1097_p5 = scmp.ne.s32.totalorder (!%p1096_p13), %s1089_s28, 0 }
  0x4e   : > { %234 = sbr.rel (%p1096_p13) target bundleno = 322 (0x142), region = 36  ;;  %s580_s13 = sshll.u32 (!%p1096_p13), %s1009_s27, 3 }
  0x4f   : > { %s237_s15 = scalar_lea.sflag (!%p1096_p13), [#allocation4], %s1009_s27  ;;  %s240_s10 = scalar_lea.vmem (!%p1096_p13), [#allocation3], %s580_s13 }
  0x55   : > { %787 = dma.done.wait (%p1097_p5), %s237_s15, 128  }
  0x56   : > { %789 = vsyncadd (%p1097_p5), %s237_s15, 4294967168  ;;  %s246_s14 = scalar_lea.sflag [#allocation7], %s1009_s27  ;;  %s249_s26 = scalar_lea.vmem [#allocation6], %s580_s13 }
  0x57   : > { %791 = dma.done.wait (%p1097_p5), %s246_s14, 128  }
  0x58   : > { %793 = vsyncadd (%p1097_p5), %s246_s14, 4294967168  ;;  %p282_p8 = scmp.lt.s32.totalorder %s812_s20, 1  ;;  %v824_v0 = vmov 0.0   ;;  %vm825_vm0 = vmmov 0   ;;  %vm290_vm1 = vcmask 261120   ;;  %v287_v1 = vld [vmem:[%s240_s10] sm:$0xff] }
  0x59   : > { %595 = vmatprep.subr.mxu0 %v824_v0  ;;  %600 = vmatprep.subr.mxu1 %v824_v0  ;;  %v288_v2 = vld [vmem:[%s249_s26] sm:$0xff]  ;;  %s286_s28 = sld [smem:[#allocation2]]  ;;  %s582_s12 = sshll.u32 %s1009_s27, 1  ;;  %vm367_vm2 = vcmask 57344  }
  0x5a   : > { %597 = vmatprep.mubr.msk.f32.mxu0 %vm825_vm0, %v824_v0  ;;  %602 = vmatprep.mubr.msk.f32.mxu1 %vm825_vm0, %v824_v0  ;;  %s283_s16 = scalar_select %p282_p8, %s812_s20, 1 }
  0x5b   : > { %596 = vmatpush3.xpose.msk.msra.mxu0 %vm290_vm1, %v287_v1  ;;  %601 = vmatpush3.xpose.msk.msra.mxu1 %vm290_vm1, %v288_v2  ;;  %s588_s1 = sshll.u32 %s812_s20, 5  ;;  %s281_s6 = scalar_lea.vmem [#allocation8], %s582_s12 }
  0x5c   : > { %s284_s8 = scalar_lea.vmem %s1081_s0, %s283_s16  ;;  %s458_s7 = sshll.u32 %s281_s6, 4  ;;  %s1034_s7 = int_to_ptr.vmem [resolvable:$true] %s458_s7 }
  0x5d   : > { %v285_v3 = vld [vmem:[%s284_s8] sm:$0x1]  ;;  %s1032_s13 = scalar_lea.hbm %s1085_s4, %s588_s1  ;;  %s444_s20 = scalar_lea.sflag [#allocation5], %s1009_s27 }
  0x5e   : > { %598 = vmatmul.mubr.msk.f32.vlgmr.msra.gmra.mrb[0].mxu0 %vm290_vm1, %v285_v3  ;;  %603 = vmatmul.mubr.msk.f32.vlgmr.msra.gmra.mrb[0].mxu1 %vm290_vm1, %v285_v3  ;;  %s734_s15 = scalar_lea.vmem %s1034_s7, 32  ;;  %p1098_p7 = scmp.ne.s32.totalorder %s1090_s29, 0 }
  0x5f   : > { %v289_v4 = vstv %s286_s28  ;;  %p735_p0 = scmp.ne.s32.totalorder %s1034_s7, %s734_s15  ;;  %s826_s10 = smov [#allocation8]  }
  0x60   : > { %s738_s14 = sshll.u32 %s826_s10, 4  ;;  %s739_s14 = int_to_ptr.vmem [resolvable:$false] %s738_s14 }
  0x61   : > { %p736_p4 = pnand %p735_p0, %p1098_p7  ;;  %s740_s26 = scalar_lea.vmem %s739_s14, 64 }
  0x62   : > { %p741_p12 = scmp.lt.s32.totalorder %s1034_s7, %s739_s14  ;;  %p742_p1 = scmp.lt.s32.totalorder %s740_s26, %s734_s15 }
  0x63   : > { %p737_p10 = pneg %p736_p4 }
  0x64   : > { %p743_p2 = por %p742_p1, %p741_p12 }
  0x66   : > { %p744_p9 = pnand %p743_p2, %p737_p10 }
 0x131   : > { %v363_v5 = vpop.f32.mrb[0].mxu0  ;;  %v438_v6 = vpop.f32.mrb[0].mxu1 }
 0x132   : > { %v364_v7 = vadd.f32 %v363_v5, %v289_v4  ;;  %v439_v8 = vadd.f32 %v438_v6, %v289_v4  ;;  %v599_v9 = vpop.f32.mrb[1].mxu0  ;;  %v604_v10 = vpop.f32.mrb[1].mxu1 }
 0x134   : > { %368 = vst.msk [vmem:[%s281_s6] sm:$0x1] %vm367_vm2, %v364_v7  ;;  %442 = vst.msk [vmem:[%s281_s6 + $0x1] sm:$0x1] %vm367_vm2, %v439_v8 }
 0x135   : > { %747 = shalt.err (!%p744_p9)
}
 0x136   : > { %s748_s27 = scalar_lea.hbm %s1032_s13, 32  ;;  %s752_s11 = scalar_lea.hbm %s1085_s4, 64 }
 0x137   : > { %p749_p11 = scmp.ne.s32.totalorder %s1032_s13, %s748_s27  ;;  %p753_p13 = scmp.lt.u32.totalorder %s1032_s13, %s1085_s4 }
 0x138   : > { %p754_p5 = scmp.lt.u32.totalorder %s752_s11, %s748_s27  ;;  %p756_p0 = scmp.lt.u32.totalorder %s748_s27, %s1032_s13 }
 0x139   : > { %p750_p3 = pnand %p749_p11, %p1098_p7 }
 0x13a   : > { %p755_p8 = por %p754_p5, %p753_p13 }
 0x13b   : > { %p751_p6 = pneg %p750_p3 }
 0x13c   : > { %p757_p4 = por %p756_p0, %p755_p8 }
 0x13e   : > { %p758_p10 = pnand %p757_p4, %p751_p6 }
 0x140   : > { %761 = shalt.err (!%p758_p10)
}
 0x141   : > { %609 = dma.vmem_to_hbm [thread:$0]  (%p1098_p7), %s1034_s7, 32, %s1032_s13, %s444_s20  }
 0x142 PF: > { %s470_s12 = sand.u32 1, %s800_s17   ;;  %p1099_p12 = scmp.ne.s32.totalorder %s1091_s5, 0 }
 0x143   : > { %p1100_p1 = scmp.ge.s32.totalorder %s820_s22, 2  ;;  %s471_s1 = scalar_lea.sflag [#allocation5], %s470_s12 }
 0x145   : > { %p619_p2 = pnand %p1100_p1, %p1099_p12 }
 0x147   : > { %795 = dma.done.wait (!%p619_p2), %s471_s1, 32  }
 0x148   : > { %797 = vsyncadd (!%p619_p2), %s471_s1, 4294967264  ;;  %s24_s22 = sadd.s32 1, %s820_s22   ;;  %s1101_s17 = smov %s804_s18 }
 0x149   : > { %p21_p9 = scmp.ge.s32.totalorder %s24_s22, 4   ;;  %s1102_s18 = smov %s808_s19 }
 0x14a   : > { %s1103_s19 = smov %s911_s30  ;;  %s1104_s20 = smov %s816_s21 }
 0x14b   : > { %s1105_s21 = smov %s1107_s24  ;;  %23 = sbr.rel (!%p21_p9) target bundleno = 10 (0xa), region = 97 }
 0x152   :  { %476 = vsyncpa [#allocation4], 1 }
 0x153   :  { %478 = vsyncpa [#allocation4 + $0x1], 1 }
 0x154   :  { %479 = vsyncpa [#allocation7], 1 }
 0x155   :  { %481 = vsyncpa [#allocation7 + $0x1], 1 }
 0x156   :  { %482 = vsyncpa [#allocation5], 1 }
 0x157   :  { %484 = vsyncpa [#allocation5 + $0x1], 1 }

</bundles_post_ra>
